<compile_context>
chip_gen: v6e
topology: v6e:2x2x1
jax: 0.10.0
libtpu: 0.0.40
codegen_flags: <defaults>
</compile_context>

<pallas_src>
import functools

import jax
import jax.numpy as jnp
from jax.experimental import pallas as pl
from jax.experimental.pallas import tpu as pltpu


def _round_up(x, m):
    return ((x + m - 1) // m) * m


def _pool_single_kernel(x_ref, o_ref, *, inv_hw):
    """Whole spatial extent in one block.  x_ref: (tile_n, HW), o_ref: (tile_n, 1)."""
    x = x_ref[...].astype(jnp.float32)
    o_ref[...] = (jnp.sum(x, axis=-1, keepdims=True) * inv_hw).astype(o_ref.dtype)


def _pool_tiled_kernel(x_ref, o_ref, acc_ref, *, inv_hw, hw, tile_hw, mask_tail):
    """Spatial axis tiled.  x_ref: (tile_n, tile_hw), o_ref/acc_ref: (tile_n, 1)."""
    j = pl.program_id(1)

    @pl.when(j == 0)
    def _():
        acc_ref[...] = jnp.zeros_like(acc_ref)

    x = x_ref[...].astype(jnp.float32)
    if mask_tail:
        # Zero out-of-range lanes of the last spatial block (no host-side pad).
        lane = jax.lax.broadcasted_iota(jnp.int32, x.shape, dimension=1)
        x = jnp.where(j * tile_hw + lane < hw, x, 0.0)
    acc_ref[...] += jnp.sum(x, axis=-1, keepdims=True)

    @pl.when(j == pl.num_programs(1) - 1)
    def _():
        o_ref[...] = (acc_ref[...] * inv_hw).astype(o_ref.dtype)


def fast_avg_pool_2d(x, flatten=False):
    """Pallas TPU implementation of FastAvgPool2d.forward.

    x: [B, C, H, W]. Returns [B, C] if flatten else [B, C, 1, 1].
    """
    B, C, H, W = x.shape
    HW = H * W
    N = B * C
    itemsize = jnp.dtype(x.dtype).itemsize

    # ---- Generation-aware VMEM plan (v5e/v6e: 128 MiB, v7x: 64 MiB/TC). ----
    try:
        vmem_bytes = int(pltpu.get_tpu_info().vmem_capacity_bytes)
    except Exception:  # be conservative if the query is unavailable
        vmem_bytes = 64 * 1024 * 1024
    block_budget = vmem_bytes // 4                 # leaves room for double-buffering
    vmem_limit = min((vmem_bytes * 3) // 4, 96 * 1024 * 1024)

    # Free reshape: [B, C, H, W] -> [B*C, H*W] (contiguous dim merge, no copy).
    x2 = x.reshape(N, HW)
    inv_hw = 1.0 / float(HW)
    row_bytes = HW * itemsize

    if 8 * row_bytes <= block_budget:
        # ---- Common path: whole HW per block; tile only the (B*C) row axis.
        tile_n = max(8, (block_budget // row_bytes) // 8 * 8)
        # Keep >= 2 row blocks when possible so both v7x TensorCores are busy.
        if N >= 16:
            tile_n = min(tile_n, _round_up(pl.cdiv(N, 2), 8))
        if tile_n >= N:
            tile_n = N  # full-extent block is always layout-legal
        grid = (pl.cdiv(N, tile_n),)

        out = pl.pallas_call(
            functools.partial(_pool_single_kernel, inv_hw=inv_hw),
            out_shape=jax.ShapeDtypeStruct((N, 1), x.dtype),
            grid_spec=pltpu.PrefetchScalarGridSpec(
                num_scalar_prefetch=0,
                grid=grid,
                in_specs=[pl.BlockSpec((tile_n, HW), lambda i: (i, 0))],
                out_specs=pl.BlockSpec((tile_n, 1), lambda i: (i, 0)),
            ),
            compiler_params=pltpu.CompilerParams(
                dimension_semantics=("parallel",),
                vmem_limit_bytes=vmem_limit,
            ),
        )(x2)
    else:
        # ---- Huge-HW fallback: tile the lane axis, accumulate in f32 scratch.
        tile_n = min(8, N)
        tile_hw = (block_budget // (max(tile_n, 8) * itemsize)) // 128 * 128
        tile_hw = max(512, min(tile_hw, _round_up(HW, 128)))
        mask_tail = (HW % tile_hw) != 0
        grid = (pl.cdiv(N, tile_n), pl.cdiv(HW, tile_hw))

        out = pl.pallas_call(
            functools.partial(
                _pool_tiled_kernel,
                inv_hw=inv_hw, hw=HW, tile_hw=tile_hw, mask_tail=mask_tail,
            ),
            out_shape=jax.ShapeDtypeStruct((N, 1), x.dtype),
            grid_spec=pltpu.PrefetchScalarGridSpec(
                num_scalar_prefetch=0,
                grid=grid,
                in_specs=[pl.BlockSpec((tile_n, tile_hw), lambda i, j: (i, j))],
                out_specs=pl.BlockSpec((tile_n, 1), lambda i, j: (i, 0)),
                scratch_shapes=[pltpu.VMEM((tile_n, 1), jnp.float32)],
            ),
            compiler_params=pltpu.CompilerParams(
                dimension_semantics=("parallel", "arbitrary"),
                vmem_limit_bytes=vmem_limit,
            ),
        )(x2)

    out = out.reshape(B, C)
    if flatten:
        return out
    return out.reshape(B, C, 1, 1)


if __name__ == "__main__":
    key = jax.random.PRNGKey(0)
    B, C, H, W = 2, 4, 16, 16
    x = jax.random.normal(key, (B, C, H, W), dtype=jnp.float32)

    # flatten=False (module default): [B, C, 1, 1]
    out = fast_avg_pool_2d(x, flatten=False)
    out = jax.block_until_ready(out)
    ref = x.reshape(B, C, -1).mean(-1).reshape(B, C, 1, 1)
    assert out.shape == (B, C, 1, 1), out.shape
    assert jnp.allclose(out, ref, rtol=1e-5, atol=1e-6), (out, ref)

    # flatten=True: [B, C]
    out_flat = fast_avg_pool_2d(x, flatten=True)
    out_flat = jax.block_until_ready(out_flat)
    ref_flat = x.reshape(B, C, -1).mean(-1)
    assert out_flat.shape == (B, C), out_flat.shape
    assert jnp.allclose(out_flat, ref_flat, rtol=1e-5, atol=1e-6), (out_flat, ref_flat)

    # Exercise a row-tail case (N = B*C not a multiple of the tile) without padding.
    x2 = jax.random.normal(key, (3, 5, 8, 8), dtype=jnp.float32)
    out2 = jax.block_until_ready(fast_avg_pool_2d(x2, flatten=True))
    ref2 = x2.reshape(3, 5, -1).mean(-1)
    assert jnp.allclose(out2, ref2, rtol=1e-5, atol=1e-6)

    print("KERNEL_OK")
</pallas_src>

<mosaic_0001>
module attributes {stable_mosaic.version = 11 : i64} {
  func.func @_pool_single_kernel(%arg0: i32, %arg1: memref<8x256xf32, #tpu.memory_space<vmem>>, %arg2: memref<8x1xf32, #tpu.memory_space<vmem>>) attributes {dimension_semantics = [#tpu.dimension_semantics<parallel>], iteration_bounds = array<i64: 1>, scalar_prefetch = 0 : i64, scratch_operands = 0 : i64, tpu.core_type = #tpu.core_type<tc>, window_params = [{transform_indices = @transform_0, window_bounds = array<i64: 8, 256>}, {transform_indices = @transform_1, window_bounds = array<i64: 8, 1>}]} {
    %c0 = arith.constant 0 : index
    %c0_0 = arith.constant 0 : index
    %0 = vector.load %arg1[%c0, %c0_0] : memref<8x256xf32, #tpu.memory_space<vmem>>, vector<8x256xf32>
    %cst = arith.constant dense<0.000000e+00> : vector<8xf32>
    %1 = vector.multi_reduction <add>, %0, %cst [1] : vector<8x256xf32> to vector<8xf32>
    %2 = vector.shape_cast %1 : vector<8xf32> to vector<8x1xf32>
    %cst_1 = arith.constant 3.906250e-03 : f32
    %3 = vector.broadcast %cst_1 : f32 to vector<8x1xf32>
    %4 = arith.mulf %2, %3 : vector<8x1xf32>
    %c0_2 = arith.constant 0 : index
    %c0_3 = arith.constant 0 : index
    %5 = vector.load %arg2[%c0_2, %c0_3] : memref<8x1xf32, #tpu.memory_space<vmem>>, vector<8x1xf32>
    tpu.vector_store %arg2[%c0_2, %c0_3], %4 {strides = array<i32>} : memref<8x1xf32, #tpu.memory_space<vmem>>, vector<8x1xf32>,
    return
  }
  func.func @transform_0(%arg0: i32) -> (i32, i32) {
    %c0_i32 = arith.constant 0 : i32
    %c0_i32_0 = arith.constant 0 : i32
    return %arg0, %c0_i32 : i32, i32
  }
  func.func @transform_1(%arg0: i32) -> (i32, i32) {
    %c0_i32 = arith.constant 0 : i32
    %c0_i32_0 = arith.constant 0 : i32
    return %arg0, %c0_i32 : i32, i32
  }
}

</mosaic_0001>

<bundles_post_ra>
// kernel: tpu_custom_call.1
= control target key start
LH: loop header
LB: loop body
LE: loop exit
PB: predicated region body
PF: predicated region fallthrough
CT: control target
= control target key end

     0   :  { %6 = vsyncpa [#allocation3], 0  ;;  %s56_s6 = smov [#allocation2]   ;;  %s73_s0 = inlined_call_operand.hbm [shape: f32[8,256], index: 0, kind: input, shape index: {}]   ;;  %s74_s1 = inlined_call_operand.vmem [shape: f32[8,1], index: 1, kind: output, shape index: {}]  }
   0x1   :  { %s13_s7 = sshll.u32 %s56_s6, 4  ;;  %s14_s7 = int_to_ptr.vmem [resolvable:$true] %s13_s7 }
   0x2   :  { %s42_s8 = scalar_lea.vmem %s14_s7, 256  ;;  %p47_p1 = scmp.lt.s32.totalorder %s14_s7, %s14_s7 }
   0x3   :  { %p43_p0 = scmp.ne.s32.totalorder %s14_s7, %s42_s8  ;;  %p48_p2 = scmp.lt.s32.totalorder %s42_s8, %s42_s8 }
   0x5   :  { %p49_p3 = por %p48_p2, %p47_p1 }
   0x7   :  { %p50_p4 = pnand %p49_p3, %p43_p0 }
   0x9   :  { %53 = shalt.err (!%p50_p4)
}
   0xa   :  { %16 = dma.hbm_to_vmem [thread:$0]  %s73_s0, 256, %s14_s7, [#allocation3]  }
   0xb   :  { %54 = dma.done.wait [#allocation3], 256  }
   0xc   :  { %55 = vsyncadd [#allocation3], 4294967040  ;;  %v20_v0 = vld [vmem:[#allocation2] sm:$0xff]  ;;  %v21_v1 = vld [vmem:[#allocation2 + $0x8] sm:$0xff]  ;;  %vm26_vm0 = vcmask 7168  }
   0xd   :  { %v22_v2 = vadd.f32 %v21_v1, %v20_v0 }
   0xf   :  { %23 = vadd.xlane.f32.xlu0 %v22_v2 }
  0x98   :  { %v24_v3 = vpop.xlane.xlu0 %23 }
  0x99   :  { %v25_v4 = vmul.f32 0.00390625, %v24_v3 }
  0x9b   :  { %27 = vst.msk [vmem:[%s74_s1] sm:$0xff] %vm26_vm0, %v25_v4 }
  0x9c   :  { %32 = vsyncpa [#allocation3], 1 }

</bundles_post_ra>
